<compile_context>
chip_gen: v7x
topology: tpu7x:2x2x1
jax: 0.10.0
libtpu: 0.0.40
codegen_flags: <defaults>
</compile_context>

<pallas_src>
import jax
import jax.numpy as jnp
from jax.experimental import pallas as pl
from jax.experimental.pallas import tpu as pltpu


def _imageda_kernel(x_ref, w1_ref, w2_ref, o_ref):
    # x_ref : (C, tL)        one image's channel x spatial tile (L on lanes)
    # w1_ref: (512, C)       Conv1 weight, kernel dim squeezed (VMEM-resident)
    # w2_ref: (2, 512)       Conv2 weight, kernel dim squeezed (VMEM-resident)
    # o_ref : (2, tL)        lane-dense output tile
    h = jnp.dot(w1_ref[...], x_ref[...], preferred_element_type=jnp.float32)
    h = jnp.maximum(h, 0.0)                                   # ReLU
    y = jnp.dot(w2_ref[...], h.astype(w2_ref.dtype),
                preferred_element_type=jnp.float32)
    o_ref[...] = y.astype(o_ref.dtype)


def imageda_forward(x, w1, w2, need_backprop, *,
                    max_tl=512,
                    compute_dtype=jnp.bfloat16,
                    vmem_limit_bytes=48 * 1024 * 1024):
    """Fused _ImageDA forward.

    x: (N, dim, L) float32           PyTorch NCL Conv1d layout (kept as-is)
    w1: (512, dim)                   Conv1.weight squeezed over the kernel dim
    w2: (2, 512)                     Conv2.weight squeezed over the kernel dim
    need_backprop: (N,)              per-image domain flags
    max_tl: spatial tile cap; keep a multiple of 256 (512 default; 1024 is
            fine on v5e/v6e with a 64 MiB vmem limit, keep <=512 on v7x f32)
    compute_dtype: jnp.bfloat16 (default, MXU-native) or None for exact f32
    returns (out (N, 2, L) in x.dtype, label (N, L) int32)
    """
    N, C, L = x.shape
    hidden = w1.shape[0]
    out_c = w2.shape[0]
    out_dtype = x.dtype            # output stays in the activation dtype

    if compute_dtype is not None:
        x = x.astype(compute_dtype)
        w1 = w1.astype(compute_dtype)
        w2 = w2.astype(compute_dtype)

    # grad_reverse is identity in the forward pass.

    # Lane-dense tiling along L.  Multiple of 256 keeps the 2x256^2 MXU on
    # v6e/v7x full; the last tile may be ragged (masked stores, no pad copy).
    tl = min(max_tl, pl.cdiv(L, 256) * 256)
    num_l_tiles = pl.cdiv(L, tl)

    itemsize = jnp.dtype(x.dtype).itemsize
    flops = 2 * N * L * C * hidden + 2 * N * L * hidden * out_c
    bytes_accessed = (N * C * L * itemsize
                      + hidden * C * itemsize
                      + out_c * hidden * itemsize
                      + N * out_c * L * jnp.dtype(out_dtype).itemsize)

    out = pl.pallas_call(
        _imageda_kernel,
        out_shape=jax.ShapeDtypeStruct((N, out_c, L), out_dtype),
        grid_spec=pltpu.PrefetchScalarGridSpec(
            num_scalar_prefetch=0,
            # Larger (spatial-tile) axis leads so v7x megacore shards it.
            grid=(num_l_tiles, N),
            in_specs=[
                # Batch dim squeezed out of the kernel view; L on the lanes.
                pl.BlockSpec((None, C, tl), lambda l, n: (n, 0, l)),
                # Weights: constant index_map -> resident for the whole grid;
                # single-buffered so no wasted second VMEM copy.
                pl.BlockSpec((hidden, C), lambda l, n: (0, 0),
                             pipeline_mode=pl.Buffered(1)),
                pl.BlockSpec((out_c, hidden), lambda l, n: (0, 0),
                             pipeline_mode=pl.Buffered(1)),
            ],
            out_specs=pl.BlockSpec((None, out_c, tl), lambda l, n: (n, 0, l)),
        ),
        compiler_params=pltpu.CompilerParams(
            dimension_semantics=("parallel", "parallel"),
            vmem_limit_bytes=vmem_limit_bytes),
        cost_estimate=pl.CostEstimate(
            flops=flops, transcendentals=0, bytes_accessed=bytes_accessed),
    )(x, w1, w2)

    # ImageLabelResizeLayer: resize the per-image domain flag to the feature
    # extent -> label of shape (N, L) filled with need_backprop[i].
    # TODO(synk): ImageLabelResizeLayer source was not provided; this matches
    # the standard DA-Faster-RCNN behaviour (broadcast label to feature size).
    label = jnp.broadcast_to(need_backprop.astype(jnp.int32)[:, None], (N, L))

    return out, label


if __name__ == "__main__":
    key = jax.random.PRNGKey(0)
    k_x, k_w1, k_w2 = jax.random.split(key, 3)

    N, dim, L = 2, 4, 16
    hidden, out_c = 512, 2

    x = jax.random.normal(k_x, (N, dim, L), dtype=jnp.float32)
    # Deterministic synthetic Conv1d weights (kernel_size=1 -> squeeze k dim).
    w1 = jax.random.normal(k_w1, (hidden, dim), dtype=jnp.float32) * 0.05
    w2 = jax.random.normal(k_w2, (out_c, hidden), dtype=jnp.float32) * 0.05
    need_backprop = jnp.array([0.0, 1.0], dtype=jnp.float32)

    # Default (bf16-compute) path.
    out, label = imageda_forward(x, w1, w2, need_backprop)
    jax.block_until_ready(out)
    jax.block_until_ready(label)

    # Reference in plain JAX (Conv1d k=1 == channel matmul), full f32.
    ref = jnp.einsum("oc,ncl->nol", w2,
                     jnp.maximum(jnp.einsum("hc,ncl->nhl", w1, x), 0.0))
    assert out.shape == (N, out_c, L)
    assert out.dtype == x.dtype
    assert label.shape == (N, L)
    # bf16 inputs with f32 accumulation -> loosened tolerance vs f32 ref.
    assert jnp.allclose(out, ref, atol=2e-2, rtol=2e-2)

    # Exact-f32 path, tight tolerance.
    out_f32, _ = imageda_forward(x, w1, w2, need_backprop, compute_dtype=None)
    jax.block_until_ready(out_f32)
    assert jnp.allclose(out_f32, ref, atol=1e-4, rtol=1e-4)

    print("KERNEL_OK")
</pallas_src>

<mosaic_0001>
module attributes {stable_mosaic.version = 11 : i64} {
  func.func @_imageda_kernel(%arg0: i32, %arg1: i32, %arg2: memref<1x4x256xbf16, #tpu.memory_space<vmem>>, %arg3: memref<512x4xbf16, #tpu.memory_space<vmem>>, %arg4: memref<2x512xbf16, #tpu.memory_space<vmem>>, %arg5: memref<1x2x256xf32, #tpu.memory_space<vmem>>) attributes {dimension_semantics = [#tpu.dimension_semantics<parallel>, #tpu.dimension_semantics<parallel>], iteration_bounds = array<i64: 1, 2>, scalar_prefetch = 0 : i64, scratch_operands = 0 : i64, tpu.core_type = #tpu.core_type<tc>, window_params = [{transform_indices = @transform_0, window_bounds = array<i64: 1, 4, 256>}, {pipeline_mode = #tpu.pipeline_mode<synchronous>, transform_indices = @transform_1, window_bounds = array<i64: 512, 4>}, {pipeline_mode = #tpu.pipeline_mode<synchronous>, transform_indices = @transform_2, window_bounds = array<i64: 2, 512>}, {transform_indices = @transform_3, window_bounds = array<i64: 1, 2, 256>}]} {
    %c0 = arith.constant 0 : index
    %c0_0 = arith.constant 0 : index
    %0 = vector.load %arg3[%c0, %c0_0] : memref<512x4xbf16, #tpu.memory_space<vmem>>, vector<512x4xbf16>
    %c0_1 = arith.constant 0 : index
    %c0_2 = arith.constant 0 : index
    %c0_3 = arith.constant 0 : index
    %1 = vector.load %arg2[%c0_1, %c0_2, %c0_3] : memref<1x4x256xbf16, #tpu.memory_space<vmem>>, vector<1x4x256xbf16>
    %2 = vector.shape_cast %1 : vector<1x4x256xbf16> to vector<4x256xbf16>
    %cst = arith.constant dense<0.000000e+00> : vector<512x256xf32>
    %3 = tpu.matmul %0, %2, %cst {dimension_numbers = #tpu.dot_dimension_numbers<[1], [0], [0], [1], [0, 0, 1, 1], [], []>} : vector<512x4xbf16>, vector<4x256xbf16>, vector<512x256xf32> -> vector<512x256xf32>
    %cst_4 = arith.constant 0.000000e+00 : f32
    %4 = vector.broadcast %cst_4 : f32 to vector<512x256xf32>
    %5 = arith.maximumf %3, %4 : vector<512x256xf32>
    %c0_5 = arith.constant 0 : index
    %c0_6 = arith.constant 0 : index
    %6 = vector.load %arg4[%c0_5, %c0_6] : memref<2x512xbf16, #tpu.memory_space<vmem>>, vector<2x512xbf16>
    %7 = arith.truncf %5 : vector<512x256xf32> to vector<512x256xbf16>
    %cst_7 = arith.constant dense<0.000000e+00> : vector<2x256xf32>
    %8 = tpu.matmul %6, %7, %cst_7 {dimension_numbers = #tpu.dot_dimension_numbers<[1], [0], [0], [1], [0, 0, 1, 1], [], []>} : vector<2x512xbf16>, vector<512x256xbf16>, vector<2x256xf32> -> vector<2x256xf32>
    %c0_8 = arith.constant 0 : index
    %c0_9 = arith.constant 0 : index
    %c0_10 = arith.constant 0 : index
    %9 = vector.load %arg5[%c0_8, %c0_9, %c0_10] : memref<1x2x256xf32, #tpu.memory_space<vmem>>, vector<1x2x256xf32>
    %10 = vector.shape_cast %9 : vector<1x2x256xf32> to vector<2x256xf32>
    %11 = vector.shape_cast %8 : vector<2x256xf32> to vector<1x2x256xf32>
    tpu.vector_store %arg5[%c0_8, %c0_9, %c0_10], %11 {strides = array<i32>} : memref<1x2x256xf32, #tpu.memory_space<vmem>>, vector<1x2x256xf32>,
    return
  }
  func.func @transform_0(%arg0: i32, %arg1: i32) -> (i32, i32, i32) {
    %c0_i32 = arith.constant 0 : i32
    %c0_i32_0 = arith.constant 0 : i32
    return %arg1, %c0_i32, %arg0 : i32, i32, i32
  }
  func.func @transform_1(%arg0: i32, %arg1: i32) -> (i32, i32) {
    %c0_i32 = arith.constant 0 : i32
    %c0_i32_0 = arith.constant 0 : i32
    %c0_i32_1 = arith.constant 0 : i32
    return %c0_i32, %c0_i32_0 : i32, i32
  }
  func.func @transform_2(%arg0: i32, %arg1: i32) -> (i32, i32) {
    %c0_i32 = arith.constant 0 : i32
    %c0_i32_0 = arith.constant 0 : i32
    %c0_i32_1 = arith.constant 0 : i32
    return %c0_i32, %c0_i32_0 : i32, i32
  }
  func.func @transform_3(%arg0: i32, %arg1: i32) -> (i32, i32, i32) {
    %c0_i32 = arith.constant 0 : i32
    %c0_i32_0 = arith.constant 0 : i32
    return %arg1, %c0_i32, %arg0 : i32, i32, i32
  }
}

</mosaic_0001>

<bundles_post_ra>
// kernel: tpu_custom_call.1
= control target key start
LH: loop header
LB: loop body
LE: loop exit
PB: predicated region body
PF: predicated region fallthrough
CT: control target
= control target key end

     0   :  { %8 = vsyncpa [#allocation3], 0  ;;  %s1919_s0 = inlined_call_operand.vmem [shape: bf16[2,4,16], index: 0, kind: input, shape index: {}]   ;;  %s1920_s1 = inlined_call_operand.vmem [shape: bf16[512,4], index: 1, kind: input, shape index: {}]   ;;  %s1921_s2 = inlined_call_operand.vmem [shape: bf16[2,512], index: 2, kind: input, shape index: {}]   ;;  %s1922_s3 = inlined_call_operand.hbm [shape: f32[2,2,16], index: 3, kind: output, shape index: {}]  }
   0x1   :  { %10 = vsyncpa [#allocation3 + $0x1], 0  ;;  %s1581_s12 = smov 0   ;;  %s1583_s13 = smov 0  }
   0x2   :  { %s1585_s14 = smov 0   ;;  %s1587_s15 = smov 0  }
   0x3   :  { %s1589_s16 = smov 0   ;;  %s1591_s17 = smov 0  }
   0x4 LB: > { %s1309_s18 = sadd.s32 4294967295, %s1556_s17   ;;  %s1310_s19 = sadd.s32 4294967294, %s1556_s17   ;;  %s1556_s17 = sphi %s1591_s17, %s16_s17   ;;  %s1552_s16 = sphi %s1589_s16, %s1929_s16   ;;  %s1548_s15 = sphi %s1587_s15, %s1928_s15   ;;  %s1544_s14 = sphi %s1585_s14, %s1927_s14   ;;  %s1540_s13 = sphi %s1583_s13, %s1926_s13   ;;  %s1536_s12 = sphi %s1581_s12, %s1925_s12  }
   0x5   : > { %s25_s20 = sadd.s32 1, %s1552_s16  ;;  %s107_s21 = sadd.s32 1, %s1544_s14 }
   0x6   : > { %p26_p0 = scmp.ge.s32.totalorder %s25_s20, 2  ;;  %p117_p1 = scmp.ne.s32.totalorder %s1544_s14, %s1540_s13 }
   0x7   : > { %p118_p2 = scmp.eq.s32.totalorder %s1309_s18, 1  ;;  %p123_p3 = scmp.ne.s32.totalorder %s1540_s13, %s1536_s12 }
   0x8   : > { %s1931_s20 = smov (%p26_p0, %s25_s20), 0  ;;  %p124_p5 = scmp.eq.s32.totalorder %s1310_s19, 1 }
   0x9   : > { %p1621_p4 = por %p118_p2, %p117_p1  ;;  %s102_s23 = ssub.s32 %s1552_s16, %s1931_s20 }
   0xa   : > { %p1313_p6 = scmp.ge.s32.totalorder %s1556_s17, 1  ;;  %p105_p7 = scmp.eq.s32.totalorder %s102_s23, 0 }
   0xb   : > { %p1628_p8 = por %p124_p5, %p123_p3  ;;  %p164_p9 = scmp.lt.s32.totalorder %s1556_s17, 3 }
   0xc   : > { %s1634_s25 = scalar_select %p105_p7, %s1544_s14, %s107_s21  }
   0xd   : > { %p165_p10 = pnand %p1313_p6, %p164_p9 }
   0xe   : > { %p196_p11 = scmp.lt.s32.totalorder (!%p165_p10), %s1548_s15, 1  ;;  %v1558_v0 = vmov (!%p165_p10), 0   ;;  %vm541_vm0 = vcmask (!%p165_p10), 1041408   ;;  %v1450_v4 = vld [vmem:[%s1920_s1] sm:$0xff] (!%p165_p10)   ;;  %vm444_vm1 = vcmask (!%p165_p10), 31744   ;;  %v1451_v5 = vld [vmem:[%s1920_s1 + $0x8] sm:$0xff] (!%p165_p10)   ;;  %v1106_v39 = vlaneseq (!%p165_p10) }
   0xf   : > { %168 = sbr.rel (%p165_p10) target bundleno = 700 (0x2bc), region = 32  ;;  %580 = vmatprep.mubr.bf16.mxu0 (!%p165_p10), %v1558_v0  ;;  %790 = vmatprep.mubr.bf16.mxu1 (!%p165_p10), %v1558_v0  ;;  %v1466_v6 = vld [vmem:[%s1920_s1 + $0xa8] sm:$0xff] (!%p165_p10)   ;;  %v1468_v7 = vld [vmem:[%s1920_s1 + $0xb0] sm:$0xff] (!%p165_p10)   ;;  %v1470_v9 = vld [vmem:[%s1920_s1 + $0xb8] sm:$0xff] (!%p165_p10)   ;;  %v1559_v37 = vmov (!%p165_p10), 1966171168  }
  0x10   : > { %v1452_v8 = vld [vmem:[%s1920_s1 + $0x10] sm:$0xff] (!%p165_p10)   ;;  %v1453_v10 = vld [vmem:[%s1920_s1 + $0x18] sm:$0xff] (!%p165_p10)   ;;  %v1472_v11 = vld [vmem:[%s1920_s1 + $0xc0] sm:$0xff] (!%p165_p10)   ;;  %v1104_v38 = vunpack.c.l.s4 (!%p165_p10), %v1559_v37  ;;  %v1107_v44 = vshrl.u32 (!%p165_p10), %v1106_v39, 7  ;;  %s190_s29 = sand.u32 (!%p165_p10), 1, %s1540_s13  }
  0x11   : > { %v1454_v12 = vld [vmem:[%s1920_s1 + $0x20] sm:$0xff] (!%p165_p10)   ;;  %v1474_v13 = vld [vmem:[%s1920_s1 + $0xc8] sm:$0xff] (!%p165_p10)   ;;  %v1476_v15 = vld [vmem:[%s1920_s1 + $0xd0] sm:$0xff] (!%p165_p10)   ;;  %s1881_s5 = scalar_lea.sflag (!%p165_p10), [#allocation3], %s190_s29 }
  0x12   : > { %v1455_v14 = vld [vmem:[%s1920_s1 + $0x28] sm:$0xff] (!%p165_p10)   ;;  %v1456_v16 = vld [vmem:[%s1920_s1 + $0x30] sm:$0xff] (!%p165_p10)   ;;  %v1477_v17 = vld [vmem:[%s1920_s1 + $0xd8] sm:$0xff] (!%p165_p10)   ;;  %v1105_v43 = vunpack.c.0.s8 (!%p165_p10), %v1104_v38 }
  0x13   : > { %v1457_v18 = vld [vmem:[%s1920_s1 + $0x38] sm:$0xff] (!%p165_p10)   ;;  %v1478_v19 = vld [vmem:[%s1920_s1 + $0xe0] sm:$0xff] (!%p165_p10)   ;;  %v1479_v21 = vld [vmem:[%s1920_s1 + $0xe8] sm:$0xff] (!%p165_p10)  }
  0x14   : > { %v1458_v20 = vld [vmem:[%s1920_s1 + $0x40] sm:$0xff] (!%p165_p10)   ;;  %v1459_v22 = vld [vmem:[%s1920_s1 + $0x48] sm:$0xff] (!%p165_p10)   ;;  %v1480_v23 = vld [vmem:[%s1920_s1 + $0xf0] sm:$0xff] (!%p165_p10)   ;;  %v1108_v51 = vsub.s32 (!%p165_p10), %v1105_v43, %v1107_v44 }
  0x15   : > { %v1460_v24 = vld [vmem:[%s1920_s1 + $0x50] sm:$0xff] (!%p165_p10)   ;;  %v1481_v25 = vld [vmem:[%s1920_s1 + $0xf8] sm:$0xff] (!%p165_p10)   ;;  %v1462_v27 = vld [vmem:[%s1920_s1 + $0x60] sm:$0xff] (!%p165_p10)  }
  0x16   : > { %s197_s26 = scalar_select %p196_p11, %s1548_s15, 1  ;;  %v1461_v26 = vld [vmem:[%s1920_s1 + $0x58] sm:$0xff]   ;;  %v1463_v28 = vld [vmem:[%s1920_s1 + $0x68] sm:$0xff]   ;;  %v1464_v29 = vld [vmem:[%s1920_s1 + $0x70] sm:$0xff]  }
  0x17   : > { %v1465_v30 = vld [vmem:[%s1920_s1 + $0x78] sm:$0xff]   ;;  %v1467_v31 = vld [vmem:[%s1920_s1 + $0x80] sm:$0xff]   ;;  %v1469_v32 = vld [vmem:[%s1920_s1 + $0x88] sm:$0xff]  }
  0x18   : > { %s1315_s27 = sshll.u32 %s197_s26, 1  ;;  %v1471_v33 = vld [vmem:[%s1920_s1 + $0x90] sm:$0xff]   ;;  %v1473_v34 = vld [vmem:[%s1920_s1 + $0x98] sm:$0xff]   ;;  %v1475_v35 = vld [vmem:[%s1920_s1 + $0xa0] sm:$0xff]  }
  0x19   : > { %s202_s30 = scalar_lea.vmem %s1919_s0, %s1315_s27  ;;  %v1382_v47 = vld.sshfl [vmem:[%s1921_s2] sm:$0x33 pattern:$0x75316420] }
  0x1a   : > { %v1348_v1 = vld.sshfl [vmem:[%s202_s30] sm:$0x33 pattern:$0x76325410]  ;;  %v1102_v50 = vcombine.high %v1382_v47, %v1382_v47  ;;  %v1806_v58 = vrot.slane %v1382_v47, %v1108_v51  ;;  %s1314_s30 = sshll.u32 %s190_s29, 2 }
  0x1b   : > { %v443_v2 = vcombine.high %v1348_v1, %v1348_v1  ;;  %v543_v3 = vsel %vm541_vm0, %v1348_v1, 0  ;;  %s192_s4 = scalar_lea.vmem [#allocation2], %s1314_s30 }
  0x1c   : > { %v1804_v55 = vrot.slane %v1102_v50, %v1108_v51 }
  0x1d   : > { %1349 = vmatprep.subr.msk.bf16.mxu0 %vm541_vm0, %v443_v2  ;;  %1388 = vmatprep.subr.msk.bf16.mxu1 %vm541_vm0, %v443_v2 }
  0x1e   : > { %549 = vmatpush1.bf16.msra.mxu0 %v543_v3  ;;  %1389 = vmatpush1.bf16.msra.mxu1 %v543_v3 }
  0x21   : > { %1350 = vmatmul.mubr.msk.bf16.vlgmr.msra.gmra.mrb[0].mxu0 %vm444_vm1, %v1450_v4  ;;  %1371 = vmatmul.mubr.msk.bf16.vlgmr.msra.gmra.mrb[0].mxu1 %vm444_vm1, %v1466_v6 }
  0x22   : > { %590 = vmatprep.mubr.bf16.mxu0 %v1558_v0  ;;  %800 = vmatprep.mubr.bf16.mxu1 %v1558_v0 }
  0x29   : > { %1351 = vmatmul.mubr.msk.bf16.gmra.mrb[4].mxu0 %vm444_vm1, %v1451_v5  ;;  %1372 = vmatmul.mubr.msk.bf16.gmra.mrb[4].mxu1 %vm444_vm1, %v1468_v7 }
  0x2a   : > { %600 = vmatprep.mubr.bf16.mxu0 %v1558_v0  ;;  %810 = vmatprep.mubr.bf16.mxu1 %v1558_v0 }
  0x31   : > { %1352 = vmatmul.mubr.msk.bf16.gmra.mrb[8].mxu0 %vm444_vm1, %v1452_v8  ;;  %1373 = vmatmul.mubr.msk.bf16.gmra.mrb[8].mxu1 %vm444_vm1, %v1470_v9 }
  0x32   : > { %610 = vmatprep.mubr.bf16.mxu0 %v1558_v0  ;;  %820 = vmatprep.mubr.bf16.mxu1 %v1558_v0 }
  0x39   : > { %1353 = vmatmul.mubr.msk.bf16.gmra.mrb[12].mxu0 %vm444_vm1, %v1453_v10  ;;  %1374 = vmatmul.mubr.msk.bf16.gmra.mrb[12].mxu1 %vm444_vm1, %v1472_v11 }
  0x3a   : > { %620 = vmatprep.mubr.bf16.mxu0 %v1558_v0  ;;  %830 = vmatprep.mubr.bf16.mxu1 %v1558_v0 }
  0x41   : > { %1354 = vmatmul.mubr.msk.bf16.gmra.mrb[16].mxu0 %vm444_vm1, %v1454_v12  ;;  %1375 = vmatmul.mubr.msk.bf16.gmra.mrb[16].mxu1 %vm444_vm1, %v1474_v13 }
  0x42   : > { %630 = vmatprep.mubr.bf16.mxu0 %v1558_v0  ;;  %840 = vmatprep.mubr.bf16.mxu1 %v1558_v0 }
  0x49   : > { %1355 = vmatmul.mubr.msk.bf16.gmra.mrb[20].mxu0 %vm444_vm1, %v1455_v14  ;;  %1376 = vmatmul.mubr.msk.bf16.gmra.mrb[20].mxu1 %vm444_vm1, %v1476_v15 }
  0x4a   : > { %640 = vmatprep.mubr.bf16.mxu0 %v1558_v0  ;;  %850 = vmatprep.mubr.bf16.mxu1 %v1558_v0 }
  0x51   : > { %1356 = vmatmul.mubr.msk.bf16.gmra.mrb[24].mxu0 %vm444_vm1, %v1456_v16  ;;  %1377 = vmatmul.mubr.msk.bf16.gmra.mrb[24].mxu1 %vm444_vm1, %v1477_v17 }
  0x52   : > { %650 = vmatprep.mubr.bf16.mxu0 %v1558_v0  ;;  %860 = vmatprep.mubr.bf16.mxu1 %v1558_v0 }
  0x59   : > { %1357 = vmatmul.mubr.msk.bf16.gmra.mrb[28].mxu0 %vm444_vm1, %v1457_v18  ;;  %1378 = vmatmul.mubr.msk.bf16.gmra.mrb[28].mxu1 %vm444_vm1, %v1478_v19 }
  0x5a   : > { %660 = vmatprep.mubr.bf16.mxu0 %v1558_v0  ;;  %870 = vmatprep.mubr.bf16.mxu1 %v1558_v0 }
  0x61   : > { %1358 = vmatmul.mubr.msk.bf16.gmra.mrb[32].mxu0 %vm444_vm1, %v1458_v20  ;;  %1379 = vmatmul.mubr.msk.bf16.gmra.mrb[32].mxu1 %vm444_vm1, %v1479_v21 }
  0x62   : > { %670 = vmatprep.mubr.bf16.mxu0 %v1558_v0  ;;  %880 = vmatprep.mubr.bf16.mxu1 %v1558_v0 }
  0x69   : > { %1359 = vmatmul.mubr.msk.bf16.gmra.mrb[36].mxu0 %vm444_vm1, %v1459_v22  ;;  %1380 = vmatmul.mubr.msk.bf16.gmra.mrb[36].mxu1 %vm444_vm1, %v1480_v23 }
  0x6a   : > { %680 = vmatprep.mubr.bf16.mxu0 %v1558_v0  ;;  %890 = vmatprep.mubr.bf16.mxu1 %v1558_v0 }
  0x71   : > { %1360 = vmatmul.mubr.msk.bf16.gmra.mrb[40].mxu0 %vm444_vm1, %v1460_v24  ;;  %1381 = vmatmul.mubr.msk.bf16.gmra.mrb[40].mxu1 %vm444_vm1, %v1481_v25 }
  0x72   : > { %690 = vmatprep.mubr.bf16.mxu0 %v1558_v0  ;;  %1155 = vmatprep.mubr.bf16.mxu1 %v1804_v55 }
  0x79   : > { %1361 = vmatmul.mubr.msk.bf16.gmra.mrb[44].mxu0 %vm444_vm1, %v1461_v26 }
  0x7a   : > { %700 = vmatprep.mubr.bf16.mxu0 %v1558_v0 }
  0x81   : > { %1362 = vmatmul.mubr.msk.bf16.gmra.mrb[48].mxu0 %vm444_vm1, %v1462_v27 }
  0x82   : > { %710 = vmatprep.mubr.bf16.mxu0 %v1558_v0 }
  0x89   : > { %1363 = vmatmul.mubr.msk.bf16.gmra.mrb[52].mxu0 %vm444_vm1, %v1463_v28 }
  0x8a   : > { %720 = vmatprep.mubr.bf16.mxu0 %v1558_v0 }
  0x91   : > { %1364 = vmatmul.mubr.msk.bf16.gmra.mrb[56].mxu0 %vm444_vm1, %v1464_v29 }
  0x92   : > { %730 = vmatprep.mubr.bf16.mxu0 %v1558_v0 }
  0x99   : > { %1365 = vmatmul.mubr.msk.bf16.gmra.mrb[60].mxu0 %vm444_vm1, %v1465_v30 }
  0x9a   : > { %740 = vmatprep.mubr.bf16.mxu0 %v1558_v0 }
  0xa1   : > { %1366 = vmatmul.mubr.msk.bf16.gmra.mrb[64].mxu0 %vm444_vm1, %v1467_v31 }
  0xa2   : > { %750 = vmatprep.mubr.bf16.mxu0 %v1558_v0 }
  0xa9   : > { %1367 = vmatmul.mubr.msk.bf16.gmra.mrb[68].mxu0 %vm444_vm1, %v1469_v32 }
  0xaa   : > { %760 = vmatprep.mubr.bf16.mxu0 %v1558_v0 }
  0xb1   : > { %1368 = vmatmul.mubr.msk.bf16.gmra.mrb[72].mxu0 %vm444_vm1, %v1471_v33 }
  0xb2   : > { %770 = vmatprep.mubr.bf16.mxu0 %v1558_v0 }
  0xb9   : > { %1369 = vmatmul.mubr.msk.bf16.gmra.mrb[76].mxu0 %vm444_vm1, %v1473_v34 }
  0xba   : > { %780 = vmatprep.mubr.bf16.mxu0 %v1558_v0 }
  0xc1   : > { %1370 = vmatmul.mubr.msk.bf16.gmra.mrb[80].mxu0 %vm444_vm1, %v1475_v35 }
  0xf4   : > { %v582_v36 = vpop.f32.mrb[0].mxu0  ;;  %v792_v54 = vpop.f32.mrb[0].mxu1 }
  0xf5   : > { %v584_v40 = vpop.f32.mrb[1].mxu0  ;;  %v901_v41 = vmax.f32 %v582_v36, 0.0  ;;  %v985_v56 = vmax.f32 %v792_v54, 0.0  ;;  %v794_v57 = vpop.f32.mrb[1].mxu1 }
  0xf6   : > { %v586_v42 = vpop.f32.mrb[2].mxu0  ;;  %v902_v48 = vmax.f32 %v584_v40, 0.0  ;;  %v986_v60 = vmax.f32 %v794_v57, 0.0  ;;  %v796_v61 = vpop.f32.mrb[2].mxu1 }
  0xf7   : > { %v903_v45 = vmax.f32 %v586_v42, 0.0  ;;  %v588_v46 = vpop.f32.mrb[3].mxu0  ;;  %v987_v63 = vmax.f32 %v796_v61, 0.0  ;;  %v798_v0 = vpop.f32.mrb[3].mxu1 }
  0xf8   : > { %v904_v49 = vmax.f32 %v588_v46, 0.0  ;;  %v988_v2 = vmax.f32 %v798_v0, 0.0 }
  0xf9   : > { %v1030_v52 = vpack.c.bf16 %v903_v45, %v901_v41  ;;  %v1809_v6 = vpack.c.bf16 %v987_v63, %v985_v56 }
  0xfa   : > { %v1031_v53 = vpack.c.bf16 %v904_v49, %v902_v48  ;;  %v1811_v9 = vpack.c.bf16 %v988_v2, %v986_v60 }
  0xfc   : > { %v592_v59 = vpop.f32.mrb[4].mxu0  ;;  %1123 = vmatprep.subr.bf16.mxu1 %v1031_v53  ;;  %v802_v12 = vpop.f32.mrb[4].mxu1 }
  0xfd   : > { %v594_v62 = vpop.f32.mrb[5].mxu0  ;;  %1124 = vmatpush1.bf16.msra.mxu1 %v1030_v52  ;;  %v905_v3 = vmax.f32 %v592_v59, 0.0  ;;  %v989_v13 = vmax.f32 %v802_v12, 0.0  ;;  %v804_v14 = vpop.f32.mrb[5].mxu1 }
  0xfe   : > { %v596_v1 = vpop.f32.mrb[6].mxu0  ;;  %v906_v7 = vmax.f32 %v594_v62, 0.0  ;;  %v990_v16 = vmax.f32 %v804_v14, 0.0  ;;  %v806_v17 = vpop.f32.mrb[6].mxu1 }
  0xff   : > { %v907_v4 = vmax.f32 %v596_v1, 0.0  ;;  %v598_v5 = vpop.f32.mrb[7].mxu0  ;;  %v991_v19 = vmax.f32 %v806_v17, 0.0  ;;  %v808_v20 = vpop.f32.mrb[7].mxu1 }
 0x100   : > { %v908_v8 = vmax.f32 %v598_v5, 0.0  ;;  %v992_v22 = vmax.f32 %v808_v20, 0.0 }
 0x101   : > { %v1032_v10 = vpack.c.bf16 %v907_v4, %v905_v3  ;;  %v1813_v26 = vpack.c.bf16 %v991_v19, %v989_v13 }
 0x102   : > { %v1033_v11 = vpack.c.bf16 %v908_v8, %v906_v7  ;;  %v1815_v29 = vpack.c.bf16 %v992_v22, %v990_v16 }
 0x104   : > { %v602_v15 = vpop.f32.mrb[8].mxu0  ;;  %1125 = vmatprep.subr.bf16.mxu1 %v1033_v11  ;;  %v812_v32 = vpop.f32.mrb[8].mxu1 }
 0x105   : > { %v604_v18 = vpop.f32.mrb[9].mxu0  ;;  %1126 = vmatpush1.bf16.msra.mxu1 %v1032_v10  ;;  %v909_v23 = vmax.f32 %v602_v15, 0.0  ;;  %v993_v33 = vmax.f32 %v812_v32, 0.0  ;;  %v814_v34 = vpop.f32.mrb[9].mxu1 }
 0x106   : > { %v606_v21 = vpop.f32.mrb[10].mxu0  ;;  %v910_v27 = vmax.f32 %v604_v18, 0.0  ;;  %v994_v36 = vmax.f32 %v814_v34, 0.0  ;;  %v816_v37 = vpop.f32.mrb[10].mxu1 }
 0x107   : > { %v911_v24 = vmax.f32 %v606_v21, 0.0  ;;  %v608_v25 = vpop.f32.mrb[11].mxu0  ;;  %v995_v39 = vmax.f32 %v816_v37, 0.0  ;;  %v818_v40 = vpop.f32.mrb[11].mxu1 }
 0x108   : > { %v912_v28 = vmax.f32 %v608_v25, 0.0  ;;  %v996_v42 = vmax.f32 %v818_v40, 0.0 }
 0x109   : > { %v1034_v30 = vpack.c.bf16 %v911_v24, %v909_v23  ;;  %v1817_v46 = vpack.c.bf16 %v995_v39, %v993_v33 }
 0x10a   : > { %v1035_v31 = vpack.c.bf16 %v912_v28, %v910_v27  ;;  %v1819_v49 = vpack.c.bf16 %v996_v42, %v994_v36 }
 0x10c   : > { %v612_v35 = vpop.f32.mrb[12].mxu0  ;;  %1127 = vmatprep.subr.bf16.mxu1 %v1035_v31  ;;  %v822_v52 = vpop.f32.mrb[12].mxu1 }
 0x10d   : > { %v614_v38 = vpop.f32.mrb[13].mxu0  ;;  %1128 = vmatpush1.bf16.msra.mxu1 %v1034_v30  ;;  %v913_v43 = vmax.f32 %v612_v35, 0.0  ;;  %v997_v53 = vmax.f32 %v822_v52, 0.0  ;;  %v824_v54 = vpop.f32.mrb[13].mxu1 }
 0x10e   : > { %v616_v41 = vpop.f32.mrb[14].mxu0  ;;  %v914_v47 = vmax.f32 %v614_v38, 0.0  ;;  %v998_v57 = vmax.f32 %v824_v54, 0.0  ;;  %v826_v59 = vpop.f32.mrb[14].mxu1 }
 0x10f   : > { %v915_v44 = vmax.f32 %v616_v41, 0.0  ;;  %v618_v45 = vpop.f32.mrb[15].mxu0  ;;  %v999_v61 = vmax.f32 %v826_v59, 0.0  ;;  %v828_v62 = vpop.f32.mrb[15].mxu1 }
 0x110   : > { %v916_v48 = vmax.f32 %v618_v45, 0.0  ;;  %v1000_v0 = vmax.f32 %v828_v62, 0.0 }
 0x111   : > { %v1036_v50 = vpack.c.bf16 %v915_v44, %v913_v43  ;;  %v1821_v4 = vpack.c.bf16 %v999_v61, %v997_v53 }
 0x112   : > { %v1037_v51 = vpack.c.bf16 %v916_v48, %v914_v47  ;;  %v1823_v8 = vpack.c.bf16 %v1000_v0, %v998_v57 }
 0x114   : > { %v622_v56 = vpop.f32.mrb[16].mxu0  ;;  %1129 = vmatprep.subr.bf16.mxu1 %v1037_v51  ;;  %v832_v12 = vpop.f32.mrb[16].mxu1 }
 0x115   : > { %v624_v60 = vpop.f32.mrb[17].mxu0  ;;  %1130 = vmatpush1.bf16.msra.mxu1 %v1036_v50  ;;  %v917_v1 = vmax.f32 %v622_v56, 0.0  ;;  %v1001_v13 = vmax.f32 %v832_v12, 0.0  ;;  %v834_v14 = vpop.f32.mrb[17].mxu1 }
 0x116   : > { %v626_v63 = vpop.f32.mrb[18].mxu0  ;;  %v918_v5 = vmax.f32 %v624_v60, 0.0  ;;  %v1002_v16 = vmax.f32 %v834_v14, 0.0  ;;  %v836_v17 = vpop.f32.mrb[18].mxu1 }
 0x117   : > { %v919_v2 = vmax.f32 %v626_v63, 0.0  ;;  %v628_v3 = vpop.f32.mrb[19].mxu0  ;;  %v1003_v19 = vmax.f32 %v836_v17, 0.0  ;;  %v838_v20 = vpop.f32.mrb[19].mxu1 }
 0x118   : > { %v920_v7 = vmax.f32 %v628_v3, 0.0  ;;  %v1004_v22 = vmax.f32 %v838_v20, 0.0 }
 0x119   : > { %v1038_v10 = vpack.c.bf16 %v919_v2, %v917_v1  ;;  %v1825_v27 = vpack.c.bf16 %v1003_v19, %v1001_v13 }
 0x11a   : > { %v1039_v11 = vpack.c.bf16 %v920_v7, %v918_v5  ;;  %v1827_v31 = vpack.c.bf16 %v1004_v22, %v1002_v16 }
 0x11c   : > { %v632_v15 = vpop.f32.mrb[20].mxu0  ;;  %1131 = vmatprep.subr.bf16.mxu1 %v1039_v11  ;;  %v842_v34 = vpop.f32.mrb[20].mxu1 }
 0x11d   : > { %v634_v18 = vpop.f32.mrb[21].mxu0  ;;  %1132 = vmatpush1.bf16.msra.mxu1 %v1038_v10  ;;  %v921_v23 = vmax.f32 %v632_v15, 0.0  ;;  %v1005_v35 = vmax.f32 %v842_v34, 0.0  ;;  %v844_v36 = vpop.f32.mrb[21].mxu1 }
 0x11e   : > { %v636_v21 = vpop.f32.mrb[22].mxu0  ;;  %v922_v28 = vmax.f32 %v634_v18, 0.0  ;;  %v1006_v38 = vmax.f32 %v844_v36, 0.0  ;;  %v846_v39 = vpop.f32.mrb[22].mxu1 }
 0x11f   : > { %v923_v24 = vmax.f32 %v636_v21, 0.0  ;;  %v638_v25 = vpop.f32.mrb[23].mxu0  ;;  %v1007_v41 = vmax.f32 %v846_v39, 0.0  ;;  %v848_v42 = vpop.f32.mrb[23].mxu1 }
 0x120   : > { %v924_v30 = vmax.f32 %v638_v25, 0.0  ;;  %v1008_v44 = vmax.f32 %v848_v42, 0.0 }
 0x121   : > { %v1040_v32 = vpack.c.bf16 %v923_v24, %v921_v23  ;;  %v1829_v50 = vpack.c.bf16 %v1007_v41, %v1005_v35 }
 0x122   : > { %v1041_v33 = vpack.c.bf16 %v924_v30, %v922_v28  ;;  %v1831_v53 = vpack.c.bf16 %v1008_v44, %v1006_v38 }
 0x124   : > { %v642_v37 = vpop.f32.mrb[24].mxu0  ;;  %1133 = vmatprep.subr.bf16.mxu1 %v1041_v33  ;;  %v852_v57 = vpop.f32.mrb[24].mxu1 }
 0x125   : > { %v644_v40 = vpop.f32.mrb[25].mxu0  ;;  %1134 = vmatpush1.bf16.msra.mxu1 %v1040_v32  ;;  %v925_v45 = vmax.f32 %v642_v37, 0.0  ;;  %v1009_v59 = vmax.f32 %v852_v57, 0.0  ;;  %v854_v60 = vpop.f32.mrb[25].mxu1 }
 0x126   : > { %v646_v43 = vpop.f32.mrb[26].mxu0  ;;  %v926_v51 = vmax.f32 %v644_v40, 0.0  ;;  %v1010_v62 = vmax.f32 %v854_v60, 0.0  ;;  %v856_v63 = vpop.f32.mrb[26].mxu1 }
 0x127   : > { %v927_v47 = vmax.f32 %v646_v43, 0.0  ;;  %v648_v48 = vpop.f32.mrb[27].mxu0  ;;  %v1011_v1 = vmax.f32 %v856_v63, 0.0  ;;  %v858_v2 = vpop.f32.mrb[27].mxu1 }
 0x128   : > { %v928_v52 = vmax.f32 %v648_v48, 0.0  ;;  %v1012_v5 = vmax.f32 %v858_v2, 0.0 }
 0x129   : > { %v1042_v54 = vpack.c.bf16 %v927_v47, %v925_v45  ;;  %v1833_v12 = vpack.c.bf16 %v1011_v1, %v1009_v59 }
 0x12a   : > { %v1043_v56 = vpack.c.bf16 %v928_v52, %v926_v51  ;;  %v1835_v15 = vpack.c.bf16 %v1012_v5, %v1010_v62 }
 0x12c   : > { %v652_v61 = vpop.f32.mrb[28].mxu0  ;;  %1135 = vmatprep.subr.bf16.mxu1 %v1043_v56  ;;  %v862_v18 = vpop.f32.mrb[28].mxu1 }
 0x12d   : > { %v654_v0 = vpop.f32.mrb[29].mxu0  ;;  %1136 = vmatpush1.bf16.msra.mxu1 %v1042_v54  ;;  %v929_v7 = vmax.f32 %v652_v61, 0.0  ;;  %v1013_v19 = vmax.f32 %v862_v18, 0.0  ;;  %v864_v20 = vpop.f32.mrb[29].mxu1 }
 0x12e   : > { %v656_v3 = vpop.f32.mrb[30].mxu0  ;;  %v930_v13 = vmax.f32 %v654_v0, 0.0  ;;  %v1014_v22 = vmax.f32 %v864_v20, 0.0  ;;  %v866_v23 = vpop.f32.mrb[30].mxu1 }
 0x12f   : > { %v931_v10 = vmax.f32 %v656_v3, 0.0  ;;  %v658_v11 = vpop.f32.mrb[31].mxu0  ;;  %v1015_v25 = vmax.f32 %v866_v23, 0.0  ;;  %v868_v28 = vpop.f32.mrb[31].mxu1 }
 0x130   : > { %v932_v14 = vmax.f32 %v658_v11, 0.0  ;;  %v1016_v32 = vmax.f32 %v868_v28, 0.0 }
 0x131   : > { %v1044_v16 = vpack.c.bf16 %v931_v10, %v929_v7  ;;  %v1837_v36 = vpack.c.bf16 %v1015_v25, %v1013_v19 }
 0x132   : > { %v1045_v17 = vpack.c.bf16 %v932_v14, %v930_v13  ;;  %v1839_v39 = vpack.c.bf16 %v1016_v32, %v1014_v22 }
 0x134   : > { %v662_v21 = vpop.f32.mrb[32].mxu0  ;;  %1137 = vmatprep.subr.bf16.mxu1 %v1045_v17  ;;  %v872_v42 = vpop.f32.mrb[32].mxu1 }
 0x135   : > { %v664_v24 = vpop.f32.mrb[33].mxu0  ;;  %1138 = vmatpush1.bf16.msra.mxu1 %v1044_v16  ;;  %v933_v33 = vmax.f32 %v662_v21, 0.0  ;;  %v1017_v43 = vmax.f32 %v872_v42, 0.0  ;;  %v874_v44 = vpop.f32.mrb[33].mxu1 }
 0x136   : > { %v666_v30 = vpop.f32.mrb[34].mxu0  ;;  %v934_v37 = vmax.f32 %v664_v24, 0.0  ;;  %v1018_v47 = vmax.f32 %v874_v44, 0.0  ;;  %v876_v48 = vpop.f32.mrb[34].mxu1 }
 0x137   : > { %v935_v34 = vmax.f32 %v666_v30, 0.0  ;;  %v668_v35 = vpop.f32.mrb[35].mxu0  ;;  %v1019_v52 = vmax.f32 %v876_v48, 0.0  ;;  %v878_v54 = vpop.f32.mrb[35].mxu1 }
 0x138   : > { %v936_v38 = vmax.f32 %v668_v35, 0.0  ;;  %v1020_v57 = vmax.f32 %v878_v54, 0.0 }
 0x139   : > { %v1046_v40 = vpack.c.bf16 %v935_v34, %v933_v33  ;;  %v1841_v62 = vpack.c.bf16 %v1019_v52, %v1017_v43 }
 0x13a   : > { %v1047_v41 = vpack.c.bf16 %v936_v38, %v934_v37  ;;  %v1843_v1 = vpack.c.bf16 %v1020_v57, %v1018_v47 }
 0x13c   : > { %v672_v45 = vpop.f32.mrb[36].mxu0  ;;  %1139 = vmatprep.subr.bf16.mxu1 %v1047_v41  ;;  %v882_v5 = vpop.f32.mrb[36].mxu1 }
 0x13d   : > { %v674_v51 = vpop.f32.mrb[37].mxu0  ;;  %1140 = vmatpush1.bf16.msra.mxu1 %v1046_v40  ;;  %v937_v59 = vmax.f32 %v672_v45, 0.0  ;;  %v1021_v7 = vmax.f32 %v882_v5, 0.0  ;;  %v884_v10 = vpop.f32.mrb[37].mxu1 }
 0x13e   : > { %v676_v56 = vpop.f32.mrb[38].mxu0  ;;  %v938_v63 = vmax.f32 %v674_v51, 0.0  ;;  %v1022_v13 = vmax.f32 %v884_v10, 0.0  ;;  %v886_v14 = vpop.f32.mrb[38].mxu1 }
 0x13f   : > { %v939_v60 = vmax.f32 %v676_v56, 0.0  ;;  %v678_v61 = vpop.f32.mrb[39].mxu0  ;;  %v1023_v17 = vmax.f32 %v886_v14, 0.0  ;;  %v888_v18 = vpop.f32.mrb[39].mxu1 }
 0x140   : > { %v940_v0 = vmax.f32 %v678_v61, 0.0  ;;  %v1024_v20 = vmax.f32 %v888_v18, 0.0 }
 0x141   : > { %v1048_v2 = vpack.c.bf16 %v939_v60, %v937_v59  ;;  %v1845_v24 = vpack.c.bf16 %v1023_v17, %v1021_v7 }
 0x142   : > { %v1049_v3 = vpack.c.bf16 %v940_v0, %v938_v63  ;;  %v1847_v30 = vpack.c.bf16 %v1024_v20, %v1022_v13 }
 0x144   : > { %v682_v11 = vpop.f32.mrb[40].mxu0  ;;  %1141 = vmatprep.subr.bf16.mxu1 %v1049_v3  ;;  %v892_v34 = vpop.f32.mrb[40].mxu1 }
 0x145   : > { %v684_v16 = vpop.f32.mrb[41].mxu0  ;;  %1142 = vmatpush1.bf16.msra.mxu1 %v1048_v2  ;;  %v941_v21 = vmax.f32 %v682_v11, 0.0  ;;  %v1025_v35 = vmax.f32 %v892_v34, 0.0  ;;  %v894_v37 = vpop.f32.mrb[41].mxu1 }
 0x146   : > { %v686_v19 = vpop.f32.mrb[42].mxu0  ;;  %v942_v25 = vmax.f32 %v684_v16, 0.0  ;;  %v1026_v40 = vmax.f32 %v894_v37, 0.0  ;;  %v896_v41 = vpop.f32.mrb[42].mxu1 }
 0x147   : > { %v943_v22 = vmax.f32 %v686_v19, 0.0  ;;  %v688_v23 = vpop.f32.mrb[43].mxu0  ;;  %v1027_v43 = vmax.f32 %v896_v41, 0.0  ;;  %v898_v44 = vpop.f32.mrb[43].mxu1 }
 0x148   : > { %v944_v28 = vmax.f32 %v688_v23, 0.0  ;;  %v1028_v47 = vmax.f32 %v898_v44, 0.0 }
 0x149   : > { %v1050_v32 = vpack.c.bf16 %v943_v22, %v941_v21  ;;  %v1849_v54 = vpack.c.bf16 %v1027_v43, %v1025_v35 }
 0x14a   : > { %v1051_v33 = vpack.c.bf16 %v944_v28, %v942_v25  ;;  %v1851_v59 = vpack.c.bf16 %v1028_v47, %v1026_v40 }
 0x14c   : > { %v692_v38 = vpop.f32.mrb[44].mxu0  ;;  %1143 = vmatprep.subr.bf16.mxu1 %v1051_v33 }
 0x14d   : > { %v694_v42 = vpop.f32.mrb[45].mxu0  ;;  %1144 = vmatpush1.bf16.msra.mxu1 %v1050_v32  ;;  %v945_v48 = vmax.f32 %v692_v38, 0.0 }
 0x14e   : > { %v696_v45 = vpop.f32.mrb[46].mxu0  ;;  %v946_v56 = vmax.f32 %v694_v42, 0.0 }
 0x14f   : > { %v947_v51 = vmax.f32 %v696_v45, 0.0  ;;  %v698_v52 = vpop.f32.mrb[47].mxu0 }
 0x150   : > { %v948_v57 = vmax.f32 %v698_v52, 0.0 }
 0x151   : > { %v1052_v60 = vpack.c.bf16 %v947_v51, %v945_v48 }
 0x152   : > { %v1053_v61 = vpack.c.bf16 %v948_v57, %v946_v56 }
 0x154   : > { %v702_v63 = vpop.f32.mrb[48].mxu0  ;;  %1145 = vmatprep.subr.bf16.mxu1 %v1053_v61 }
 0x155   : > { %v704_v0 = vpop.f32.mrb[49].mxu0  ;;  %1146 = vmatpush1.bf16.msra.mxu1 %v1052_v60  ;;  %v949_v3 = vmax.f32 %v702_v63, 0.0 }
 0x156   : > { %v706_v2 = vpop.f32.mrb[50].mxu0  ;;  %v950_v10 = vmax.f32 %v704_v0, 0.0 }
 0x157   : > { %v951_v5 = vmax.f32 %v706_v2, 0.0  ;;  %v708_v7 = vpop.f32.mrb[51].mxu0  ;;  %v1118_v2 = vcombine.high %v1804_v55, %v1804_v55 }
 0x158   : > { %v952_v11 = vmax.f32 %v708_v7, 0.0 }
 0x159   : > { %v1054_v13 = vpack.c.bf16 %v951_v5, %v949_v3 }
 0x15a   : > { %v1055_v14 = vpack.c.bf16 %v952_v11, %v950_v10 }
 0x15c   : > { %v712_v16 = vpop.f32.mrb[52].mxu0  ;;  %1147 = vmatprep.subr.bf16.mxu1 %v1055_v14 }
 0x15d   : > { %v714_v17 = vpop.f32.mrb[53].mxu0  ;;  %1148 = vmatpush1.bf16.msra.mxu1 %v1054_v13  ;;  %v953_v19 = vmax.f32 %v712_v16, 0.0 }
 0x15e   : > { %v716_v18 = vpop.f32.mrb[54].mxu0  ;;  %v954_v22 = vmax.f32 %v714_v17, 0.0 }
 0x15f   : > { %v955_v20 = vmax.f32 %v716_v18, 0.0  ;;  %v718_v21 = vpop.f32.mrb[55].mxu0 }
 0x160   : > { %v956_v23 = vmax.f32 %v718_v21, 0.0 }
 0x161   : > { %v1056_v25 = vpack.c.bf16 %v955_v20, %v953_v19 }
 0x162   : > { %v1057_v28 = vpack.c.bf16 %v956_v23, %v954_v22 }
 0x164   : > { %v722_v32 = vpop.f32.mrb[56].mxu0  ;;  %1149 = vmatprep.subr.bf16.mxu1 %v1057_v28 }
 0x165   : > { %v724_v33 = vpop.f32.mrb[57].mxu0  ;;  %1150 = vmatpush1.bf16.msra.mxu1 %v1056_v25  ;;  %v957_v35 = vmax.f32 %v722_v32, 0.0 }
 0x166   : > { %v726_v34 = vpop.f32.mrb[58].mxu0  ;;  %v958_v40 = vmax.f32 %v724_v33, 0.0 }
 0x167   : > { %v959_v37 = vmax.f32 %v726_v34, 0.0  ;;  %v728_v38 = vpop.f32.mrb[59].mxu0 }
 0x168   : > { %v960_v41 = vmax.f32 %v728_v38, 0.0 }
 0x169   : > { %v1058_v42 = vpack.c.bf16 %v959_v37, %v957_v35 }
 0x16a   : > { %v1059_v43 = vpack.c.bf16 %v960_v41, %v958_v40 }
 0x16c   : > { %v732_v44 = vpop.f32.mrb[60].mxu0  ;;  %1151 = vmatprep.subr.bf16.mxu1 %v1059_v43 }
 0x16d   : > { %v734_v45 = vpop.f32.mrb[61].mxu0  ;;  %1152 = vmatpush1.bf16.msra.mxu1 %v1058_v42  ;;  %v961_v48 = vmax.f32 %v732_v44, 0.0 }
 0x16e   : > { %v736_v47 = vpop.f32.mrb[62].mxu0  ;;  %v962_v56 = vmax.f32 %v734_v45, 0.0 }
 0x16f   : > { %v963_v51 = vmax.f32 %v736_v47, 0.0  ;;  %v738_v52 = vpop.f32.mrb[63].mxu0 }
 0x170   : > { %v964_v57 = vmax.f32 %v738_v52, 0.0 }
 0x171   : > { %v1060_v60 = vpack.c.bf16 %v963_v51, %v961_v48 }
 0x172   : > { %v1061_v61 = vpack.c.bf16 %v964_v57, %v962_v56 }
 0x174   : > { %v742_v63 = vpop.f32.mrb[64].mxu0  ;;  %1153 = vmatprep.subr.bf16.mxu1 %v1061_v61 }
 0x175   : > { %v744_v0 = vpop.f32.mrb[65].mxu0  ;;  %1154 = vmatpush1.bf16.msra.mxu1 %v1060_v60  ;;  %v965_v5 = vmax.f32 %v742_v63, 0.0 }
 0x176   : > { %v746_v3 = vpop.f32.mrb[66].mxu0  ;;  %v966_v11 = vmax.f32 %v744_v0, 0.0 }
 0x177   : > { %v967_v7 = vmax.f32 %v746_v3, 0.0  ;;  %v748_v10 = vpop.f32.mrb[67].mxu0 }
 0x178   : > { %v968_v13 = vmax.f32 %v748_v10, 0.0  ;;  %1156 = vmatmul.mubr.bf16.vlgmr.msra.gmra.mrb[44].mxu1 %v1806_v58 }
 0x179   : > { %v1062_v14 = vpack.c.bf16 %v967_v7, %v965_v5  ;;  %1196 = vmatprep.mubr.bf16.mxu1 %v1118_v2 }
 0x17a   : > { %v1063_v16 = vpack.c.bf16 %v968_v13, %v966_v11 }
 0x17c   : > { %v752_v17 = vpop.f32.mrb[68].mxu0  ;;  %1164 = vmatprep.subr.bf16.mxu1 %v1063_v16 }
 0x17d   : > { %v754_v18 = vpop.f32.mrb[69].mxu0  ;;  %1165 = vmatpush1.bf16.msra.mxu1 %v1062_v14  ;;  %v969_v20 = vmax.f32 %v752_v17, 0.0 }
 0x17e   : > { %v756_v19 = vpop.f32.mrb[70].mxu0  ;;  %v970_v55 = vmax.f32 %v754_v18, 0.0 }
 0x17f   : > { %v971_v21 = vmax.f32 %v756_v19, 0.0  ;;  %v758_v22 = vpop.f32.mrb[71].mxu0 }
 0x180   : > { %v972_v23 = vmax.f32 %v758_v22, 0.0 }
 0x181   : > { %v1064_v25 = vpack.c.bf16 %v971_v21, %v969_v20 }
 0x182   : > { %v1065_v28 = vpack.c.bf16 %v972_v23, %v970_v55 }
 0x184   : > { %v762_v32 = vpop.f32.mrb[72].mxu0  ;;  %1166 = vmatprep.subr.bf16.mxu1 %v1065_v28 }
 0x185   : > { %v764_v33 = vpop.f32.mrb[73].mxu0  ;;  %1167 = vmatpush1.bf16.msra.mxu1 %v1064_v25  ;;  %v973_v35 = vmax.f32 %v762_v32, 0.0 }
 0x186   : > { %v766_v34 = vpop.f32.mrb[74].mxu0  ;;  %v974_v40 = vmax.f32 %v764_v33, 0.0 }
 0x187   : > { %v975_v37 = vmax.f32 %v766_v34, 0.0  ;;  %v768_v38 = vpop.f32.mrb[75].mxu0 }
 0x188   : > { %v976_v41 = vmax.f32 %v768_v38, 0.0 }
 0x189   : > { %v1066_v42 = vpack.c.bf16 %v975_v37, %v973_v35 }
 0x18a   : > { %v1067_v43 = vpack.c.bf16 %v976_v41, %v974_v40 }
 0x18c   : > { %v772_v44 = vpop.f32.mrb[76].mxu0  ;;  %1168 = vmatprep.subr.bf16.mxu1 %v1067_v43 }
 0x18d   : > { %v774_v45 = vpop.f32.mrb[77].mxu0  ;;  %1169 = vmatpush1.bf16.msra.mxu1 %v1066_v42  ;;  %v977_v48 = vmax.f32 %v772_v44, 0.0 }
 0x18e   : > { %v776_v47 = vpop.f32.mrb[78].mxu0  ;;  %v978_v56 = vmax.f32 %v774_v45, 0.0 }
 0x18f   : > { %v979_v51 = vmax.f32 %v776_v47, 0.0  ;;  %v778_v52 = vpop.f32.mrb[79].mxu0 }
 0x190   : > { %v980_v57 = vmax.f32 %v778_v52, 0.0 }
 0x191   : > { %v1068_v60 = vpack.c.bf16 %v979_v51, %v977_v48 }
 0x192   : > { %v1069_v61 = vpack.c.bf16 %v980_v57, %v978_v56 }
 0x194   : > { %v782_v63 = vpop.f32.mrb[80].mxu0  ;;  %1170 = vmatprep.subr.bf16.mxu1 %v1069_v61 }
 0x195   : > { %v784_v0 = vpop.f32.mrb[81].mxu0  ;;  %1171 = vmatpush1.bf16.msra.mxu1 %v1068_v60  ;;  %v981_v3 = vmax.f32 %v782_v63, 0.0 }
 0x196   : > { %v786_v2 = vpop.f32.mrb[82].mxu0  ;;  %v982_v10 = vmax.f32 %v784_v0, 0.0 }
 0x197   : > { %v983_v5 = vmax.f32 %v786_v2, 0.0  ;;  %v788_v7 = vpop.f32.mrb[83].mxu0 }
 0x198   : > { %v984_v11 = vmax.f32 %v788_v7, 0.0 }
 0x199   : > { %v1070_v13 = vpack.c.bf16 %v983_v5, %v981_v3 }
 0x19a   : > { %v1071_v14 = vpack.c.bf16 %v984_v11, %v982_v10 }
 0x19c   : > { %1172 = vmatprep.subr.bf16.mxu1 %v1071_v14 }
 0x19d   : > { %1173 = vmatpush1.bf16.msra.mxu1 %v1070_v13 }
 0x19e   : > { %1174 = vmatprep.subr.bf16.mxu1 %v1811_v9 }
 0x1a1   : > { %1175 = vmatpush1.bf16.msra.mxu1 %v1809_v6  ;;  %v1117_v6 = vcombine.high %v1806_v58, %v1806_v58 }
 0x1a2   : > { %1176 = vmatprep.subr.bf16.mxu1 %v1815_v29 }
 0x1a5   : > { %1177 = vmatpush1.bf16.msra.mxu1 %v1813_v26 }
 0x1a6   : > { %1178 = vmatprep.subr.bf16.mxu1 %v1819_v49 }
 0x1a9   : > { %1179 = vmatpush1.bf16.msra.mxu1 %v1817_v46 }
 0x1aa   : > { %1180 = vmatprep.subr.bf16.mxu1 %v1823_v8 }
 0x1ad   : > { %1181 = vmatpush1.bf16.msra.mxu1 %v1821_v4 }
 0x1ae   : > { %1182 = vmatprep.subr.bf16.mxu1 %v1827_v31 }
 0x1b1   : > { %1183 = vmatpush1.bf16.msra.mxu1 %v1825_v27 }
 0x1b2   : > { %1184 = vmatprep.subr.bf16.mxu1 %v1831_v53 }
 0x1b5   : > { %1185 = vmatpush1.bf16.msra.mxu1 %v1829_v50 }
 0x1b6   : > { %1186 = vmatprep.subr.bf16.mxu1 %v1835_v15 }
 0x1b9   : > { %1187 = vmatpush1.bf16.msra.mxu1 %v1833_v12 }
 0x1ba   : > { %1188 = vmatprep.subr.bf16.mxu1 %v1839_v39 }
 0x1bd   : > { %1189 = vmatpush1.bf16.msra.mxu1 %v1837_v36 }
 0x1be   : > { %1190 = vmatprep.subr.bf16.mxu1 %v1843_v1 }
 0x1c1   : > { %1191 = vmatpush1.bf16.msra.mxu1 %v1841_v62 }
 0x1c2   : > { %1192 = vmatprep.subr.bf16.mxu1 %v1847_v30 }
 0x1c5   : > { %1193 = vmatpush1.bf16.msra.mxu1 %v1845_v24 }
 0x1c6   : > { %1194 = vmatprep.subr.bf16.mxu1 %v1851_v59 }
 0x1c9   : > { %1195 = vmatpush1.bf16.msra.mxu1 %v1849_v54 }
 0x1cc   : > { %1197 = vmatmul.mubr.bf16.vlgmr.msra.gmra.mrb[44].mxu1 %v1117_v6 }
 0x29d   : > { %1224 = sbr.rel (!%p1621_p4) target bundleno = 700 (0x2bc), region = 36 }
 0x29f   : > { %v1198_v9 = vpop.f32.mrb[44].mxu1 }
 0x2a0   : > { %v1200_v26 = vpop.f32.mrb[45].mxu1 }
 0x2a1   : > { %v1207_v29 = vcombine.low %v1198_v9, %v1200_v26  ;;  %v1202_v46 = vpop.f32.mrb[46].mxu1 }
 0x2a2   : > { %v1203_v49 = vpop.f32.mrb[47].mxu1 }
 0x2a3   : > { %1383 = vst.sshfl [vmem:[%s192_s4] sm:$0x33 pattern:$0x76325410] %v1207_v29 }
 0x2a4   : > { %1230 = vsyncadd %s1881_s5, 32  ;;  %s1385_s6 = sshll.u32 %s1548_s15, 5  ;;  %s1237_s7 = sshll.u32 %s192_s4, 4  ;;  %s1238_s7 = int_to_ptr.vmem [resolvable:$true] %s1237_s7 }
 0x2a5   : > { %s1234_s10 = scalar_lea.hbm %s1922_s3, %s1385_s6  ;;  %s1482_s11 = scalar_lea.vmem %s1238_s7, 32 }
 0x2a6   : > { %p1483_p12 = scmp.ne.s32.totalorder %s1238_s7, %s1482_s11  ;;  %s1560_s18 = smov [#allocation2]  }
 0x2a7   : > { %s1484_s19 = sshll.u32 %s1560_s18, 4  ;;  %s1485_s19 = int_to_ptr.vmem [resolvable:$false] %s1484_s19 }
 0x2a8   : > { %s1486_s21 = scalar_lea.vmem %s1485_s19, 128  ;;  %p1487_p13 = scmp.lt.s32.totalorder %s1238_s7, %s1485_s19 }
 0x2a9   : > { %p1488_p0 = scmp.lt.s32.totalorder %s1486_s21, %s1482_s11 }
 0x2ab   : > { %p1489_p1 = por %p1488_p0, %p1487_p13 }
 0x2ad   : > { %p1490_p2 = pnand %p1489_p1, %p1483_p12 }
 0x2af   : > { %1493 = shalt.err (!%p1490_p2)
}
 0x2b0   : > { %s1494_s22 = scalar_lea.hbm %s1234_s10, 32  ;;  %s1496_s26 = scalar_lea.hbm %s1922_s3, 64 }
 0x2b1   : > { %p1495_p3 = scmp.ne.s32.totalorder %s1234_s10, %s1494_s22  ;;  %p1497_p4 = scmp.lt.u32.totalorder %s1234_s10, %s1922_s3 }
 0x2b2   : > { %p1498_p5 = scmp.lt.u32.totalorder %s1496_s26, %s1494_s22  ;;  %p1500_p7 = scmp.lt.u32.totalorder %s1494_s22, %s1234_s10 }
 0x2b4   : > { %p1499_p6 = por %p1498_p5, %p1497_p4 }
 0x2b6   : > { %p1501_p9 = por %p1500_p7, %p1499_p6 }
 0x2b8   : > { %p1502_p10 = pnand %p1501_p9, %p1495_p3 }
 0x2ba   : > { %1505 = shalt.err (!%p1502_p10)
}
 0x2bb   : > { %1240 = dma.vmem_to_hbm [thread:$0]  %s1238_s7, 32, %s1234_s10, %s1881_s5  }
 0x2bc PF: > { %p1399_p11 = scmp.ge.s32.totalorder %s1556_s17, 2  ;;  %s1249_s29 = sand.u32 1, %s1536_s12  }
 0x2bd   : > { %s1250_s30 = scalar_lea.sflag [#allocation3], %s1249_s29 }
 0x2be   : > { %p1396_p12 = pnand %p1399_p11, %p1628_p8 }
 0x2c0   : > { %1531 = dma.done.wait (!%p1396_p12), %s1250_s30, 64  }
 0x2c1   : > { %1533 = vsyncadd (!%p1396_p12), %s1250_s30, 4294967232  ;;  %s16_s17 = sadd.s32 1, %s1556_s17   ;;  %s1925_s12 = smov %s1540_s13 }
 0x2c2   : > { %p13_p13 = scmp.ge.s32.totalorder %s16_s17, 4   ;;  %s1926_s13 = smov %s1544_s14 }
 0x2c3   : > { %s1927_s14 = smov %s1634_s25  ;;  %s1928_s15 = smov %s1552_s16 }
 0x2c4   : > { %s1929_s16 = smov %s1931_s20  ;;  %15 = sbr.rel (!%p13_p13) target bundleno = 4 (0x4), region = 67 }
 0x2cb   :  { %1255 = vsyncpa [#allocation3], 1 }
 0x2cc   :  { %1257 = vsyncpa [#allocation3 + $0x1], 1 }

</bundles_post_ra>
